<compile_context>
chip_gen: v6e
topology: v6e:2x2x1
jax: 0.10.0
libtpu: 0.0.40
codegen_flags: <defaults>
</compile_context>

<pallas_src>
import jax
import jax.numpy as jnp
from jax.experimental import pallas as pl
from jax.experimental.pallas import tpu as pltpu


def _round_up(n: int, m: int) -> int:
    return ((n + m - 1) // m) * m


def _embed_kernel(x_ref, wt_ref, b_ref, out_ref):
    # x_ref:   (TM, F)  tile of flattened tokens (streamed)
    # wt_ref:  (F, E)   pre-transposed weight, lane-dense, VMEM-resident
    # b_ref:   (1, E)   bias, VMEM-resident
    # out_ref: (TM, E)  output tile
    acc = jnp.dot(x_ref[...], wt_ref[...], preferred_element_type=jnp.float32)
    out_ref[...] = (acc + b_ref[...]).astype(out_ref.dtype)


def _const_block_spec(shape):
    # Weight / bias never change block index -> one buffer is enough (saves the
    # pointless second buffer's VMEM).  Fall back gracefully if pipeline_mode
    # is not accepted by this BlockSpec signature.
    try:
        return pl.BlockSpec(shape, lambda i: (0, 0), pipeline_mode=pl.Buffered(1))
    except TypeError:
        return pl.BlockSpec(shape, lambda i: (0, 0))


def _choose_tile_and_vmem(N, F, E, in_bytes, out_bytes):
    """Pick the token-axis tile TM and a matching vmem_limit_bytes.

    Budget ~50% of this generation's physical VMEM for the pipeline buffers:
      2 * TM * (F*in_bytes + E*out_bytes)   (double-buffered x tile + out tile)
      + F*E*4 + E*4                         (resident weight + bias)
    """
    try:
        vmem_cap = int(getattr(pltpu.get_tpu_info(), "vmem_capacity_bytes",
                               64 << 20))
    except Exception:
        vmem_cap = 64 << 20  # conservative: v7x per-TensorCore VMEM
    budget = vmem_cap // 2

    w_bytes = F * E * 4
    b_bytes = E * 4
    per_row = 2 * (F * in_bytes + E * out_bytes)

    tm = (budget - w_bytes - b_bytes) // per_row
    tm = max(8, min(int(tm), 2048))      # 2048: per-grid-step overhead amortized
    tm = (tm // 8) * 8                   # sublane-aligned

    # v7x megacore: make sure the parallel grid has >= 2 steps when N allows.
    if tm >= N and N > 8:
        tm = max(8, _round_up(pl.cdiv(N, 2), 8))
    if N <= 8:
        tm = N                           # single block equal to the full dim
    tm = min(tm, _round_up(N, 8))

    vmem_needed = 2 * tm * (F * in_bytes + E * out_bytes) + 2 * (w_bytes + b_bytes)
    vmem_limit = int(min(vmem_cap, max(vmem_needed + (4 << 20), 32 << 20)))
    return tm, vmem_limit


def embed_block_forward(inputs, params, *, out_dtype=None):
    """Mirror of Embed_Block.forward.

    inputs = [x, t, e, src_key_padding_mask]
    returns [embed_x_, t, e, x_cls_expand, src_key_padding_mask, t]
    """
    x, t, e, src_key_padding_mask = inputs
    weight = params["weight"]          # (E, F) -- PyTorch nn.Linear layout
    bias = params["bias"]              # (E,)
    cls_token = params["cls_token"]    # (1, 1, E)

    B, S, F = x.shape
    E = weight.shape[0]
    N = B * S
    out_dtype = x.dtype if out_dtype is None else jnp.dtype(out_dtype)

    in_bytes = jnp.dtype(x.dtype).itemsize
    out_bytes = jnp.dtype(out_dtype).itemsize

    TM, vmem_limit = _choose_tile_and_vmem(N, F, E, in_bytes, out_bytes)
    grid = (pl.cdiv(N, TM),)           # ragged last block handled by Pallas

    x_flat = x.reshape(N, F)           # free bitcast (contiguous)
    w_t = weight.T                     # one-time (E,F)->(F,E); negligible vs N*E
    b2d = bias.reshape(1, E)

    flops = 2 * N * E * F
    bytes_accessed = (N * F * in_bytes
                      + F * E * int(weight.dtype.itemsize)
                      + E * int(bias.dtype.itemsize)
                      + N * E * out_bytes)

    emb_flat = pl.pallas_call(
        _embed_kernel,
        out_shape=jax.ShapeDtypeStruct((N, E), out_dtype),
        grid_spec=pl.GridSpec(
            grid=grid,
            in_specs=[
                pl.BlockSpec((TM, F), lambda i: (i, 0)),   # x tile (streamed)
                _const_block_spec((F, E)),                 # weight (resident)
                _const_block_spec((1, E)),                 # bias   (resident)
            ],
            out_specs=pl.BlockSpec((TM, E), lambda i: (i, 0)),
        ),
        compiler_params=pltpu.CompilerParams(
            dimension_semantics=("parallel",),             # megacore-shardable
            vmem_limit_bytes=vmem_limit,
        ),
        cost_estimate=pl.CostEstimate(
            flops=flops, transcendentals=0, bytes_accessed=bytes_accessed),
    )(x_flat, w_t, b2d)

    embed_x_ = emb_flat.reshape(B, S, E)   # exact shapes -> free, no slice

    # Trivial broadcast: keep it out of the kernel (no extra writeback stream).
    x_cls_expand = jnp.broadcast_to(cls_token, (B, 1, E))

    return [embed_x_, t, e, x_cls_expand, src_key_padding_mask, t]


def init_params(key, n_feat_dim, embed_dim):
    # Deterministic init matching nn.Linear's default (uniform +-1/sqrt(fan_in))
    # and cls_token = ones (as in Embed_Block.__init__).
    kw, kb = jax.random.split(key)
    bound = 1.0 / jnp.sqrt(jnp.float32(n_feat_dim))
    weight = jax.random.uniform(
        kw, (embed_dim, n_feat_dim), jnp.float32, -bound, bound
    )
    bias = jax.random.uniform(kb, (embed_dim,), jnp.float32, -bound, bound)
    cls_token = jnp.ones((1, 1, embed_dim), jnp.float32)
    return {"weight": weight, "bias": bias, "cls_token": cls_token}


if __name__ == "__main__":
    key = jax.random.PRNGKey(0)
    B, S, F, E = 2, 8, 4, 32        # batch, seq, n_feat_dim, embed_dim

    k_x, k_t, k_e, k_p = jax.random.split(key, 4)
    x = jax.random.normal(k_x, (B, S, F), jnp.float32)
    t = jax.random.normal(k_t, (B,), jnp.float32)
    e = jax.random.normal(k_e, (B,), jnp.float32)
    src_key_padding_mask = jnp.zeros((B, S), jnp.bool_)

    params = init_params(k_p, F, E)

    out = embed_block_forward([x, t, e, src_key_padding_mask], params)
    out = jax.block_until_ready(out)

    # sanity check vs. pure-JAX reference
    ref_embed = x @ params["weight"].T + params["bias"]
    ref_cls = jnp.broadcast_to(params["cls_token"], (B, 1, E))
    assert out[0].shape == (B, S, E)
    assert jnp.allclose(out[0], ref_embed, atol=1e-5), "embed mismatch"
    assert jnp.allclose(out[3], ref_cls), "cls mismatch"
    assert out[1] is t and out[2] is e and out[4] is src_key_padding_mask
    assert out[5] is t

    print("KERNEL_OK")
</pallas_src>

<mosaic_0001>
module attributes {stable_mosaic.version = 11 : i64} {
  func.func @_embed_kernel(%arg0: i32, %arg1: memref<8x4xf32, #tpu.memory_space<vmem>>, %arg2: memref<4x32xf32, #tpu.memory_space<vmem>>, %arg3: memref<1x32xf32, #tpu.memory_space<vmem>>, %arg4: memref<8x32xf32, #tpu.memory_space<vmem>>) attributes {dimension_semantics = [#tpu.dimension_semantics<parallel>], iteration_bounds = array<i64: 2>, scalar_prefetch = 0 : i64, scratch_operands = 0 : i64, tpu.core_type = #tpu.core_type<tc>, window_params = [{transform_indices = @transform_0, window_bounds = array<i64: 8, 4>}, {pipeline_mode = #tpu.pipeline_mode<synchronous>, transform_indices = @transform_1, window_bounds = array<i64: 4, 32>}, {pipeline_mode = #tpu.pipeline_mode<synchronous>, transform_indices = @transform_2, window_bounds = array<i64: 1, 32>}, {transform_indices = @transform_3, window_bounds = array<i64: 8, 32>}]} {
    %c0 = arith.constant 0 : index
    %c0_0 = arith.constant 0 : index
    %0 = vector.load %arg1[%c0, %c0_0] : memref<8x4xf32, #tpu.memory_space<vmem>>, vector<8x4xf32>
    %c0_1 = arith.constant 0 : index
    %c0_2 = arith.constant 0 : index
    %1 = vector.load %arg2[%c0_1, %c0_2] : memref<4x32xf32, #tpu.memory_space<vmem>>, vector<4x32xf32>
    %cst = arith.constant dense<0.000000e+00> : vector<8x32xf32>
    %2 = tpu.matmul %0, %1, %cst {dimension_numbers = #tpu.dot_dimension_numbers<[1], [0], [0], [1], [0, 0, 1, 1], [], []>} : vector<8x4xf32>, vector<4x32xf32>, vector<8x32xf32> -> vector<8x32xf32>
    %c0_3 = arith.constant 0 : index
    %c0_4 = arith.constant 0 : index
    %3 = vector.load %arg3[%c0_3, %c0_4] : memref<1x32xf32, #tpu.memory_space<vmem>>, vector<1x32xf32>
    %4 = vector.broadcast %3 : vector<1x32xf32> to vector<8x32xf32>
    %5 = arith.addf %2, %4 : vector<8x32xf32>
    %c0_5 = arith.constant 0 : index
    %c0_6 = arith.constant 0 : index
    %6 = vector.load %arg4[%c0_5, %c0_6] : memref<8x32xf32, #tpu.memory_space<vmem>>, vector<8x32xf32>
    tpu.vector_store %arg4[%c0_5, %c0_6], %5 {strides = array<i32>} : memref<8x32xf32, #tpu.memory_space<vmem>>, vector<8x32xf32>,
    return
  }
  func.func @transform_0(%arg0: i32) -> (i32, i32) {
    %c0_i32 = arith.constant 0 : i32
    %c0_i32_0 = arith.constant 0 : i32
    return %arg0, %c0_i32 : i32, i32
  }
  func.func @transform_1(%arg0: i32) -> (i32, i32) {
    %c0_i32 = arith.constant 0 : i32
    %c0_i32_0 = arith.constant 0 : i32
    %c0_i32_1 = arith.constant 0 : i32
    return %c0_i32, %c0_i32_0 : i32, i32
  }
  func.func @transform_2(%arg0: i32) -> (i32, i32) {
    %c0_i32 = arith.constant 0 : i32
    %c0_i32_0 = arith.constant 0 : i32
    %c0_i32_1 = arith.constant 0 : i32
    return %c0_i32, %c0_i32_0 : i32, i32
  }
  func.func @transform_3(%arg0: i32) -> (i32, i32) {
    %c0_i32 = arith.constant 0 : i32
    %c0_i32_0 = arith.constant 0 : i32
    return %arg0, %c0_i32 : i32, i32
  }
}

</mosaic_0001>

<bundles_post_ra>
// kernel: tpu_custom_call.1
= control target key start
LH: loop header
LB: loop body
LE: loop exit
PB: predicated region body
PF: predicated region fallthrough
CT: control target
= control target key end

     0   :  { %8 = vsyncpa [#allocation3], 0  ;;  %s573_s0 = inlined_call_operand.vmem [shape: f32[16,4], index: 0, kind: input, shape index: {}]   ;;  %s574_s1 = inlined_call_operand.vmem [shape: f32[4,32], index: 1, kind: input, shape index: {}]   ;;  %s575_s2 = inlined_call_operand.vmem [shape: f32[1,32], index: 2, kind: input, shape index: {}]   ;;  %s576_s3 = inlined_call_operand.hbm [shape: f32[16,32], index: 3, kind: output, shape index: {}]  }
   0x1   :  { %10 = vsyncpa [#allocation3 + $0x1], 0  ;;  %s474_s12 = smov 0   ;;  %s476_s13 = smov 0  }
   0x2   :  { %s478_s14 = smov 0   ;;  %s480_s15 = smov 0  }
   0x3 LB: > { %s495_s16 = sadd.s32 4294967295, %s449_s15   ;;  %s328_s17 = sadd.s32 4294967294, %s449_s15   ;;  %s449_s15 = sphi %s480_s15, %s582_s15   ;;  %s445_s14 = sphi %s478_s14, %s581_s14   ;;  %s441_s13 = sphi %s476_s13, %s580_s13   ;;  %s437_s12 = sphi %s474_s12, %s579_s12  }
   0x4   : > { %s499_s18 = sadd.s32 1, %s449_s15   ;;  %s91_s19 = sadd.s32 1, %s445_s14 }
   0x5   : > { %s88_s20 = ssub.s32 %s449_s15, %s499_s18  ;;  %p101_p0 = scmp.ne.s32.totalorder %s445_s14, %s441_s13 }
   0x6   : > { %p89_p1 = scmp.eq.s32.totalorder %s88_s20, 0  ;;  %p102_p2 = scmp.eq.s32.totalorder %s495_s16, 1 }
   0x7   : > { %p107_p3 = scmp.ne.s32.totalorder %s441_s13, %s437_s12  ;;  %p108_p4 = scmp.eq.s32.totalorder %s328_s17, 1 }
   0x8   : > { %s510_s21 = scalar_select %p89_p1, %s445_s14, %s91_s19  }
   0x9   : > { %p512_p5 = por %p102_p2, %p101_p0  ;;  %p516_p6 = por %p108_p4, %p107_p3 }
   0xa   : > { %p331_p7 = scmp.ge.s32.totalorder %s449_s15, 1  ;;  %p139_p8 = scmp.lt.s32.totalorder %s449_s15, 3 }
   0xc   : > { %p140_p9 = pnand %p331_p7, %p139_p8 }
   0xd   : > { %p162_p10 = scmp.lt.s32.totalorder (!%p140_p9), %s495_s16, 1  ;;  %s159_s4 = sand.u32 (!%p140_p9), 1, %s441_s13  }
   0xe   : > { %143 = sbr.rel (%p140_p9) target bundleno = 232 (0xe8), region = 32  ;;  %s332_s5 = sshll.u32 (!%p140_p9), %s159_s4, 3 }
   0xf   : > { %s338_s8 = sshll.u32 (!%p140_p9), %s495_s16, 7  ;;  %s161_s9 = scalar_lea.vmem (!%p140_p9), [#allocation2], %s332_s5 }
  0x10   : > { %s269_s10 = sshll.u32 (!%p140_p9), %s161_s9, 4  ;;  %s538_s19 = scalar_lea.hbm (!%p140_p9), %s576_s3, %s338_s8  ;;  %s270_s10 = int_to_ptr.vmem [resolvable:$true] %s269_s10 }
  0x11   : > { %s256_s20 = scalar_lea.sflag (!%p140_p9), [#allocation3], %s159_s4  ;;  %s389_s24 = scalar_lea.vmem (!%p140_p9), %s270_s10, 128 }
  0x12   : > { %p390_p11 = scmp.ne.s32.totalorder (!%p140_p9), %s270_s10, %s389_s24 }
  0x13   : > { %v167_v0 = vld [vmem:[%s574_s1] sm:$0xf]  ;;  %vm179_vm0 = vcmask 1043456   ;;  %v451_v1 = vmov 0.0   ;;  %vm452_vm1 = vmmov 0   ;;  %s163_s26 = scalar_select %p162_p10, %s495_s16, 1 }
  0x14   : > { %343 = vmatprep.subr.mxu0 %v451_v1  ;;  %345 = vmatprep.mubr.msk.f32.mxu0 %vm452_vm1, %v451_v1  ;;  %vm175_vm2 = vcmask 31744   ;;  %v334_v3 = vld [vmem:[%s575_s2] ss:$0 sm:$0xff]  ;;  %vm253_vm3 = vcmask 261120   ;;  %p391_p12 = pnand %p390_p11, %p512_p5  ;;  %s453_s16 = smov [#allocation2]  }
  0x15   : > { %344 = vmatpush3.msk.msra.mxu0 %vm179_vm0, %v167_v0  ;;  %s333_s27 = sshll.u32 %s163_s26, 3  ;;  %s393_s25 = sshll.u32 %s453_s16, 4  ;;  %s394_s25 = int_to_ptr.vmem [resolvable:$false] %s393_s25 }
  0x16   : > { %s165_s30 = scalar_lea.vmem %s573_s0, %s333_s27  ;;  %p392_p13 = pneg %p391_p12 }
  0x17   : > { %v166_v2 = vld [vmem:[%s165_s30] sm:$0xff]  ;;  %s395_s26 = scalar_lea.vmem %s394_s25, 256  ;;  %p396_p0 = scmp.lt.s32.totalorder %s270_s10, %s394_s25 }
  0x18   : > { %346 = vmatmul.mubr.msk.f32.vlgmr.msra.gmra.mxu0 %vm175_vm2, %v166_v2  ;;  %p397_p1 = scmp.lt.s32.totalorder %s395_s26, %s389_s24 }
  0x1a   : > { %p398_p2 = por %p397_p1, %p396_p0 }
  0x1c   : > { %p399_p3 = pnand %p398_p2, %p392_p13 }
  0xd8   : > { %v249_v4 = vpop.f32.mrf.mxu0 }
  0xd9   : > { %v250_v5 = vadd.f32 %v334_v3, %v249_v4 }
  0xda   : > { %v347_v6 = vpop.f32.mrf.mxu0 }
  0xdb   : > { %254 = vst.msk [vmem:[%s161_s9] sm:$0xff] %vm253_vm3, %v250_v5 }
  0xdc   : > { %402 = shalt.err (!%p399_p3)
}
  0xdd   : > { %s403_s27 = scalar_lea.hbm %s538_s19, 128  ;;  %s407_s30 = scalar_lea.hbm %s576_s3, 256 }
  0xde   : > { %p404_p4 = scmp.ne.s32.totalorder %s538_s19, %s403_s27  ;;  %p408_p9 = scmp.lt.s32.totalorder %s538_s19, %s576_s3 }
  0xdf   : > { %p409_p10 = scmp.lt.s32.totalorder %s407_s30, %s403_s27 }
  0xe0   : > { %p405_p7 = pnand %p404_p4, %p512_p5 }
  0xe1   : > { %p410_p11 = por %p409_p10, %p408_p9 }
  0xe2   : > { %p406_p8 = pneg %p405_p7 }
  0xe4   : > { %p411_p12 = pnand %p410_p11, %p406_p8 }
  0xe6   : > { %414 = shalt.err (!%p411_p12)
}
  0xe7   : > { %348 = dma.vmem_to_hbm [thread:$0]  (%p512_p5), %s270_s10, 128, %s538_s19, %s256_s20  }
  0xe8 PF: > { %p354_p13 = scmp.ge.s32.totalorder %s449_s15, 2  ;;  %s281_s6 = sand.u32 1, %s437_s12  }
  0xe9   : > { %s282_s7 = scalar_lea.sflag [#allocation3], %s281_s6 }
  0xea   : > { %p351_p0 = pnand %p354_p13, %p516_p6 }
  0xec   : > { %p352_p1 = pneg %p351_p0 }
  0xee   : > { %432 = dma.done.wait (%p352_p1), %s282_s7, 128  }
  0xef   : > { %434 = vsyncadd (%p352_p1), %s282_s7, 4294967168  ;;  %p13_p2 = scmp.ge.s32.totalorder %s499_s18, 4   ;;  %s579_s12 = smov %s441_s13 }
  0xf0   : > { %s580_s13 = smov %s445_s14  ;;  %s581_s14 = smov %s510_s21 }
  0xf1   : > { %s582_s15 = smov %s499_s18  ;;  %15 = sbr.rel (!%p13_p2) target bundleno = 3 (0x3), region = 67 }
  0xf6   :  { %287 = vsyncpa [#allocation3], 1 }
  0xf7   :  { %289 = vsyncpa [#allocation3 + $0x1], 1 }

</bundles_post_ra>
